<compile_context>
chip_gen: v7x
topology: tpu7x:2x2x1
jax: 0.10.0
libtpu: 0.0.40
codegen_flags: <defaults>
</compile_context>

<pallas_src>
import functools

import jax
import jax.numpy as jnp
from jax.experimental import pallas as pl
from jax.experimental.pallas import tpu as pltpu


def _round_up(x, m):
    return ((x + m - 1) // m) * m


def _pick_k_tile(k, pref=512):
    """Largest of (pref, 256, 128) that divides k (k is a multiple of 128)."""
    for t in (pref, 256, 128):
        if k % t == 0:
            return t
    return k


def _matmul_bias_kernel(a_ref, b_ref, bias_ref, o_ref, acc_ref):
    k = pl.program_id(1)

    @pl.when(k == 0)
    def _():
        acc_ref[...] = jnp.zeros_like(acc_ref)

    acc_ref[...] += jnp.dot(a_ref[...], b_ref[...],
                            preferred_element_type=jnp.float32)

    @pl.when(k == pl.num_programs(1) - 1)
    def _():
        o_ref[...] = (acc_ref[...] + bias_ref[...]).astype(o_ref.dtype)


@functools.partial(jax.jit, static_argnames=("tm", "tk"))
def _matmul_bias(a, b, bias2d, *, tm, tk):
    """out[M, F] = a[M, K] @ b[K, F] + bias2d[1, F], f32 accumulation."""
    M, K = a.shape
    F = b.shape[1]
    grid = (M // tm, K // tk)
    return pl.pallas_call(
        _matmul_bias_kernel,
        out_shape=jax.ShapeDtypeStruct((M, F), jnp.float32),
        grid_spec=pltpu.PrefetchScalarGridSpec(
            num_scalar_prefetch=0,
            grid=grid,
            in_specs=[
                pl.BlockSpec((tm, tk), lambda i, k: (i, k)),  # A row/K tile
                pl.BlockSpec((tk, F), lambda i, k: (k, 0)),   # B K tile (lane-dense F)
                pl.BlockSpec((1, F), lambda i, k: (0, 0)),    # bias row
            ],
            out_specs=pl.BlockSpec((tm, F), lambda i, k: (i, 0)),
            scratch_shapes=[pltpu.VMEM((tm, F), jnp.float32)],
        ),
        compiler_params=pltpu.CompilerParams(
            dimension_semantics=("parallel", "arbitrary"),
            vmem_limit_bytes=48 * 1024 * 1024,
        ),
    )(a, b, bias2d)


def init_gcn_params(key, inpt_dim, hidden_dim, n_classes, n_layers):
    """Mirrors GCNLayer.__init__: theta, bias ~ U(-stdv, stdv), stdv = 1/sqrt(outdim)."""
    dims = [inpt_dim] + [hidden_dim] * (n_layers - 1) + [n_classes]
    params = []
    for li in range(n_layers):
        indim, outdim = dims[li], dims[li + 1]
        stdv = 1.0 / jnp.sqrt(jnp.asarray(outdim, jnp.float32))
        key, k_w, k_b = jax.random.split(key, 3)
        theta = jax.random.uniform(
            k_w, (indim, outdim), jnp.float32, minval=-stdv, maxval=stdv
        )
        bias = jax.random.uniform(
            k_b, (outdim,), jnp.float32, minval=-stdv, maxval=stdv
        )
        params.append((theta, bias))
    return params


def gcn_forward(hatA, x, params, *, row_tile=256, k_tile=512,
                compute_dtype=jnp.float32):
    """Pallas GCN forward.

    row_tile: 256 matches the v6e/v7x 2x256^2 MXU; use 128 on v5e (4x128^2).
    compute_dtype: jnp.bfloat16 recommended on v6e/v7x (halves hatA HBM
    traffic and hits bf16 MXU peak); f32 accumulation is kept either way.
    """
    N, D = x.shape
    Np = _round_up(N, row_tile)
    Dp = _round_up(D, 128)

    hatA_p = jnp.zeros((Np, Np), compute_dtype).at[:N, :N].set(
        hatA.astype(compute_dtype))
    h = jnp.zeros((Np, Dp), jnp.float32).at[:N, :D].set(x.astype(jnp.float32))

    tk_adj = _pick_k_tile(Np, pref=k_tile)

    for theta, bias in params:
        indim, outdim = theta.shape
        Ip = _round_up(indim, 128)
        Fp = _round_up(outdim, 128)
        assert h.shape[1] == Ip, (h.shape, theta.shape)

        theta_p = jnp.zeros((Ip, Fp), compute_dtype).at[:indim, :outdim].set(
            theta.astype(compute_dtype))
        bias_p = jnp.zeros((1, Fp), jnp.float32).at[0, :outdim].set(bias)
        zero_bias = jnp.zeros((1, Fp), jnp.float32)

        # 1) grid-invariant feature transform: XW = h @ theta        (K = Ip)
        xw = _matmul_bias(h.astype(compute_dtype), theta_p, zero_bias,
                          tm=row_tile, tk=_pick_k_tile(Ip, pref=k_tile))
        # 2) neighborhood aggregation:         out = hatA @ XW + b   (K = Np)
        h = _matmul_bias(hatA_p, xw.astype(compute_dtype), bias_p,
                         tm=row_tile, tk=tk_adj)

    # TODO(synk): for very large sparse graphs, replace the dense padded hatA
    # with a block-sparse gather via scalar-prefetched block indices.
    n_classes = params[-1][0].shape[1]
    return h[:N, :n_classes]


def gcn_forward_ref(hatA, x, params):
    """Pure-JAX reference of the PyTorch forward: (hatA @ X) @ theta + bias."""
    for theta, bias in params:
        x = (hatA @ x) @ theta + bias
    return x


if __name__ == "__main__":
    # Small shapes consistent with the module: N nodes, 3 GCN layers.
    N = 256         # number of graph nodes
    INPT_DIM = 64   # input feature dim
    HIDDEN = 64     # hidden dim
    N_CLASSES = 8   # output classes
    N_LAYERS = 3

    key = jax.random.PRNGKey(0)
    key, k_adj, k_x, k_params = jax.random.split(key, 4)

    # Deterministic normalized adjacency hatA = D^{-1/2} (A + I) D^{-1/2}
    A = (jax.random.uniform(k_adj, (N, N)) > 0.9).astype(jnp.float32)
    A = jnp.maximum(A, A.T) + jnp.eye(N, dtype=jnp.float32)
    deg = A.sum(axis=1)
    d_inv_sqrt = 1.0 / jnp.sqrt(deg)
    hatA = A * d_inv_sqrt[:, None] * d_inv_sqrt[None, :]

    # Node features and parameters
    X = jax.random.normal(k_x, (N, INPT_DIM), jnp.float32)
    params = init_gcn_params(k_params, INPT_DIM, HIDDEN, N_CLASSES, N_LAYERS)

    out = gcn_forward(hatA, X, params)
    out = jax.block_until_ready(out)

    ref = gcn_forward_ref(hatA, X, params)
    assert out.shape == (N, N_CLASSES), out.shape
    max_err = float(jnp.max(jnp.abs(out - ref)))
    assert jnp.allclose(out, ref, atol=5e-4, rtol=5e-4), max_err
    print("KERNEL_OK")
</pallas_src>

<mosaic_0001>
module attributes {stable_mosaic.version = 11 : i64} {
  func.func @_matmul_bias_kernel(%arg0: i32, %arg1: i32, %arg2: memref<256x128xf32, #tpu.memory_space<vmem>>, %arg3: memref<128x128xf32, #tpu.memory_space<vmem>>, %arg4: memref<1x128xf32, #tpu.memory_space<vmem>>, %arg5: memref<256x128xf32, #tpu.memory_space<vmem>>, %arg6: memref<256x128xf32, #tpu.memory_space<vmem>>) attributes {dimension_semantics = [#tpu.dimension_semantics<parallel>, #tpu.dimension_semantics<arbitrary>], iteration_bounds = array<i64: 1, 1>, scalar_prefetch = 0 : i64, scratch_operands = 1 : i64, tpu.core_type = #tpu.core_type<tc>, window_params = [{transform_indices = @transform_0, window_bounds = array<i64: 256, 128>}, {transform_indices = @transform_1, window_bounds = array<i64: 128, 128>}, {pipeline_mode = #tpu.pipeline_mode<synchronous>, transform_indices = @transform_2, window_bounds = array<i64: 1, 128>}, {transform_indices = @transform_3, window_bounds = array<i64: 256, 128>}]} {
    %c0_i32 = arith.constant 0 : i32
    %0 = arith.cmpi eq, %arg1, %c0_i32 : i32
    %1 = arith.extui %0 : i1 to i32
    %c0_i32_0 = arith.constant 0 : i32
    %2 = arith.cmpi ne, %1, %c0_i32_0 : i32
    scf.if %2 {
      %cst_10 = arith.constant 0.000000e+00 : f32
      %12 = vector.broadcast %cst_10 : f32 to vector<256x128xf32>
      %c0_11 = arith.constant 0 : index
      %c0_12 = arith.constant 0 : index
      %13 = vector.load %arg6[%c0_11, %c0_12] : memref<256x128xf32, #tpu.memory_space<vmem>>, vector<256x128xf32>
      tpu.vector_store %arg6[%c0_11, %c0_12], %12 {strides = array<i32>} : memref<256x128xf32, #tpu.memory_space<vmem>>, vector<256x128xf32>,
    } else {
    }
    %c0 = arith.constant 0 : index
    %c0_1 = arith.constant 0 : index
    %3 = vector.load %arg6[%c0, %c0_1] : memref<256x128xf32, #tpu.memory_space<vmem>>, vector<256x128xf32>
    %c0_2 = arith.constant 0 : index
    %c0_3 = arith.constant 0 : index
    %4 = vector.load %arg2[%c0_2, %c0_3] : memref<256x128xf32, #tpu.memory_space<vmem>>, vector<256x128xf32>
    %c0_4 = arith.constant 0 : index
    %c0_5 = arith.constant 0 : index
    %5 = vector.load %arg3[%c0_4, %c0_5] : memref<128x128xf32, #tpu.memory_space<vmem>>, vector<128x128xf32>
    %cst = arith.constant dense<0.000000e+00> : vector<256x128xf32>
    %6 = tpu.matmul %4, %5, %cst {dimension_numbers = #tpu.dot_dimension_numbers<[1], [0], [0], [1], [0, 0, 1, 1], [], []>} : vector<256x128xf32>, vector<128x128xf32>, vector<256x128xf32> -> vector<256x128xf32>
    %7 = arith.addf %3, %6 : vector<256x128xf32>
    %c0_6 = arith.constant 0 : index
    %c0_7 = arith.constant 0 : index
    %8 = vector.load %arg6[%c0_6, %c0_7] : memref<256x128xf32, #tpu.memory_space<vmem>>, vector<256x128xf32>
    tpu.vector_store %arg6[%c0_6, %c0_7], %7 {strides = array<i32>} : memref<256x128xf32, #tpu.memory_space<vmem>>, vector<256x128xf32>,
    %c0_i32_8 = arith.constant 0 : i32
    %9 = arith.cmpi eq, %arg1, %c0_i32_8 : i32
    %10 = arith.extui %9 : i1 to i32
    %c0_i32_9 = arith.constant 0 : i32
    %11 = arith.cmpi ne, %10, %c0_i32_9 : i32
    scf.if %11 {
      %c0_10 = arith.constant 0 : index
      %c0_11 = arith.constant 0 : index
      %12 = vector.load %arg6[%c0_10, %c0_11] : memref<256x128xf32, #tpu.memory_space<vmem>>, vector<256x128xf32>
      %c0_12 = arith.constant 0 : index
      %c0_13 = arith.constant 0 : index
      %13 = vector.load %arg4[%c0_12, %c0_13] : memref<1x128xf32, #tpu.memory_space<vmem>>, vector<1x128xf32>
      %14 = vector.broadcast %13 : vector<1x128xf32> to vector<256x128xf32>
      %15 = arith.addf %12, %14 : vector<256x128xf32>
      %c0_14 = arith.constant 0 : index
      %c0_15 = arith.constant 0 : index
      %16 = vector.load %arg5[%c0_14, %c0_15] : memref<256x128xf32, #tpu.memory_space<vmem>>, vector<256x128xf32>
      tpu.vector_store %arg5[%c0_14, %c0_15], %15 {strides = array<i32>} : memref<256x128xf32, #tpu.memory_space<vmem>>, vector<256x128xf32>,
    } else {
    }
    return
  }
  func.func @transform_0(%arg0: i32, %arg1: i32) -> (i32, i32) {
    %c0_i32 = arith.constant 0 : i32
    return %arg0, %arg1 : i32, i32
  }
  func.func @transform_1(%arg0: i32, %arg1: i32) -> (i32, i32) {
    %c0_i32 = arith.constant 0 : i32
    %c0_i32_0 = arith.constant 0 : i32
    return %arg1, %c0_i32 : i32, i32
  }
  func.func @transform_2(%arg0: i32, %arg1: i32) -> (i32, i32) {
    %c0_i32 = arith.constant 0 : i32
    %c0_i32_0 = arith.constant 0 : i32
    %c0_i32_1 = arith.constant 0 : i32
    return %c0_i32, %c0_i32_0 : i32, i32
  }
  func.func @transform_3(%arg0: i32, %arg1: i32) -> (i32, i32) {
    %c0_i32 = arith.constant 0 : i32
    %c0_i32_0 = arith.constant 0 : i32
    return %arg0, %c0_i32 : i32, i32
  }
}

</mosaic_0001>

<bundles_post_ra>
// kernel: _matmul_bias.1
= control target key start
LH: loop header
LB: loop body
LE: loop exit
PB: predicated region body
PF: predicated region fallthrough
CT: control target
= control target key end

     0   :  { %8 = vsyncpa [#allocation4], 0  ;;  %s933_s0 = inlined_call_operand.hbm [shape: f32[256,128], index: 0, kind: input, shape index: {}]   ;;  %s934_s1 = inlined_call_operand.hbm [shape: f32[128,128], index: 1, kind: input, shape index: {}]   ;;  %s935_s2 = inlined_call_operand.vmem [shape: f32[1,128], index: 2, kind: input, shape index: {}]   ;;  %s936_s3 = inlined_call_operand.hbm [shape: f32[256,128], index: 3, kind: output, shape index: {}]  }
   0x1   :  { %9 = vsyncpa [#allocation7], 0 }
   0x2   :  { %10 = vsyncpa [#allocation5], 0  ;;  %s826_s12 = smov [#allocation3]   ;;  %s754_s16 = scalar_lea.hbm %s933_s0, 4096 }
   0x3   :  { %s16_s13 = sshll.u32 %s826_s12, 4  ;;  %p755_p0 = scmp.ne.s32.totalorder %s933_s0, %s754_s16  ;;  %s17_s13 = int_to_ptr.vmem [resolvable:$true] %s16_s13 }
   0x4   :  { %p758_p1 = scmp.lt.u32.totalorder %s754_s16, %s933_s0 }
   0x6   :  { %p760_p2 = pnand %p758_p1, %p755_p0 }
   0x8   :  { %763 = shalt.err (!%p760_p2)
}
   0x9   :  { %s764_s21 = scalar_lea.vmem %s17_s13, 4096  ;;  %p769_p4 = scmp.lt.s32.totalorder %s17_s13, %s17_s13 }
   0xa   :  { %p765_p3 = scmp.ne.s32.totalorder %s17_s13, %s764_s21  ;;  %p770_p5 = scmp.lt.s32.totalorder %s764_s21, %s764_s21 }
   0xc   :  { %p771_p6 = por %p770_p5, %p769_p4 }
   0xe   :  { %p772_p7 = pnand %p771_p6, %p765_p3 }
  0x10   :  { %775 = shalt.err (!%p772_p7)
}
  0x11   :  { %s827_s22 = smov 128   ;;  %s828_s23 = smov 8  }
  0x12   :  { %22 = dma.hbm_to_vmem [thread:$0]  %s933_s0, 4096, %s17_s13, [#allocation4], %s827_s22, %s827_s22, %s828_s23  }
  0x13   :  { %s829_s26 = smov [#allocation6]   ;;  %s776_s30 = scalar_lea.hbm %s934_s1, 2048 }
  0x14   :  { %s28_s27 = sshll.u32 %s829_s26, 4  ;;  %p777_p8 = scmp.ne.s32.totalorder %s934_s1, %s776_s30  ;;  %s29_s27 = int_to_ptr.vmem [resolvable:$true] %s28_s27 }
  0x15   :  { %p780_p9 = scmp.lt.u32.totalorder %s776_s30, %s934_s1 }
  0x17   :  { %p782_p10 = pnand %p780_p9, %p777_p8 }
  0x19   :  { %785 = shalt.err (!%p782_p10)
}
  0x1a   :  { %s786_s8 = scalar_lea.vmem %s29_s27, 2048  ;;  %p791_p12 = scmp.lt.s32.totalorder %s29_s27, %s29_s27 }
  0x1b   :  { %p787_p11 = scmp.ne.s32.totalorder %s29_s27, %s786_s8  ;;  %p792_p13 = scmp.lt.s32.totalorder %s786_s8, %s786_s8 }
  0x1d   :  { %p793_p0 = por %p792_p13, %p791_p12 }
  0x1f   :  { %p794_p1 = pnand %p793_p0, %p787_p11 }
  0x21   :  { %797 = shalt.err (!%p794_p1)
}
  0x22   :  { %34 = dma.hbm_to_vmem [thread:$0]  %s934_s1, 2048, %s29_s27, [#allocation7], %s827_s22, %s827_s22, %s828_s23  }
  0x23   :  { %820 = dma.done.wait [#allocation4], 4096  }
  0x24   :  { %821 = vsyncadd [#allocation4], 4294963200 }
  0x25   :  { %822 = dma.done.wait [#allocation7], 2048  }
  0x26   :  { %823 = vsyncadd [#allocation7], 4294965248  ;;  %v143_v0 = vld [vmem:[#allocation6] sm:$0xff]  ;;  %v144_v1 = vld [vmem:[#allocation6 + $0x8] sm:$0xff] }
  0x27   :  { %v145_v2 = vld [vmem:[#allocation6 + $0x10] sm:$0xff]  ;;  %v701_v3 = vpack.c.bf16 %v144_v1, %v143_v0  ;;  %v146_v4 = vld [vmem:[#allocation6 + $0x18] sm:$0xff]  ;;  %v147_v6 = vld [vmem:[#allocation6 + $0x20] sm:$0xff] }
  0x28   :  { %v705_v5 = vpack.c.bf16 %v146_v4, %v145_v2  ;;  %v148_v7 = vld [vmem:[#allocation6 + $0x28] sm:$0xff]  ;;  %v111_v9 = vld [vmem:[#allocation3] sm:$0xff]  ;;  %v149_v11 = vld [vmem:[#allocation6 + $0x30] sm:$0xff] }
  0x29   :  { %702 = vmatprep.subr.bf16.mxu0 %v701_v3  ;;  %733 = vmatprep.subr.bf16.mxu1 %v701_v3  ;;  %v709_v8 = vpack.c.bf16 %v148_v7, %v147_v6  ;;  %v127_v10 = vld [vmem:[#allocation3 + $0x80] sm:$0xff]  ;;  %v150_v12 = vld [vmem:[#allocation6 + $0x38] sm:$0xff]  ;;  %v152_v15 = vld [vmem:[#allocation6 + $0x48] sm:$0xff] }
  0x2a   :  { %704 = vmatpush3.bf16.msra.mxu0 %v701_v3  ;;  %741 = vmatpush3.bf16.msra.mxu1 %v701_v3  ;;  %v713_v13 = vpack.c.bf16 %v150_v12, %v149_v11  ;;  %v151_v14 = vld [vmem:[#allocation6 + $0x40] sm:$0xff]  ;;  %v153_v17 = vld [vmem:[#allocation6 + $0x50] sm:$0xff]  ;;  %v154_v18 = vld [vmem:[#allocation6 + $0x58] sm:$0xff] }
  0x2b   :  { %706 = vmatprep.subr.bf16.mxu0 %v705_v5  ;;  %734 = vmatprep.subr.bf16.mxu1 %v705_v5  ;;  %v717_v16 = vpack.c.bf16 %v152_v15, %v151_v14  ;;  %v721_v19 = vpack.c.bf16 %v154_v18, %v153_v17  ;;  %v155_v20 = vld [vmem:[#allocation6 + $0x60] sm:$0xff]  ;;  %v156_v21 = vld [vmem:[#allocation6 + $0x68] sm:$0xff]  ;;  %v157_v23 = vld [vmem:[#allocation6 + $0x70] sm:$0xff] }
  0x2c   :  { %653 = vmatprep.mubr.f32.mxu0 %v111_v9  ;;  %677 = vmatprep.mubr.f32.mxu1 %v127_v10  ;;  %v725_v22 = vpack.c.bf16 %v156_v21, %v155_v20  ;;  %v158_v24 = vld [vmem:[#allocation6 + $0x78] sm:$0xff]  ;;  %v112_v26 = vld [vmem:[#allocation3 + $0x8] sm:$0xff]  ;;  %v113_v28 = vld [vmem:[#allocation3 + $0x10] sm:$0xff] }
  0x2d   :  { %v729_v25 = vpack.c.bf16 %v158_v24, %v157_v23  ;;  %v128_v27 = vld [vmem:[#allocation3 + $0x88] sm:$0xff]  ;;  %v129_v29 = vld [vmem:[#allocation3 + $0x90] sm:$0xff]  ;;  %v114_v30 = vld [vmem:[#allocation3 + $0x18] sm:$0xff] }
  0x2e   :  { %708 = vmatpush3.bf16.msra.mxu0 %v705_v5  ;;  %742 = vmatpush3.bf16.msra.mxu1 %v705_v5  ;;  %v130_v31 = vld [vmem:[#allocation3 + $0x98] sm:$0xff]  ;;  %v115_v32 = vld [vmem:[#allocation3 + $0x20] sm:$0xff]  ;;  %v116_v34 = vld [vmem:[#allocation3 + $0x28] sm:$0xff] }
  0x2f   :  { %710 = vmatprep.subr.bf16.mxu0 %v709_v8  ;;  %735 = vmatprep.subr.bf16.mxu1 %v709_v8  ;;  %v131_v33 = vld [vmem:[#allocation3 + $0xa0] sm:$0xff]  ;;  %v132_v35 = vld [vmem:[#allocation3 + $0xa8] sm:$0xff]  ;;  %v117_v36 = vld [vmem:[#allocation3 + $0x30] sm:$0xff] }
  0x30   :  { %v133_v37 = vld [vmem:[#allocation3 + $0xb0] sm:$0xff]  ;;  %v118_v38 = vld [vmem:[#allocation3 + $0x38] sm:$0xff]  ;;  %v119_v40 = vld [vmem:[#allocation3 + $0x40] sm:$0xff] }
  0x31   :  { %v134_v39 = vld [vmem:[#allocation3 + $0xb8] sm:$0xff]  ;;  %v135_v41 = vld [vmem:[#allocation3 + $0xc0] sm:$0xff]  ;;  %v120_v42 = vld [vmem:[#allocation3 + $0x48] sm:$0xff] }
  0x32   :  { %712 = vmatpush3.bf16.msra.mxu0 %v709_v8  ;;  %743 = vmatpush3.bf16.msra.mxu1 %v709_v8  ;;  %v136_v43 = vld [vmem:[#allocation3 + $0xc8] sm:$0xff]  ;;  %v121_v44 = vld [vmem:[#allocation3 + $0x50] sm:$0xff]  ;;  %v122_v46 = vld [vmem:[#allocation3 + $0x58] sm:$0xff] }
  0x33   :  { %714 = vmatprep.subr.bf16.mxu0 %v713_v13  ;;  %736 = vmatprep.subr.bf16.mxu1 %v713_v13  ;;  %v137_v45 = vld [vmem:[#allocation3 + $0xd0] sm:$0xff]  ;;  %v138_v47 = vld [vmem:[#allocation3 + $0xd8] sm:$0xff]  ;;  %v123_v48 = vld [vmem:[#allocation3 + $0x60] sm:$0xff] }
  0x34   :  { %v139_v49 = vld [vmem:[#allocation3 + $0xe0] sm:$0xff]  ;;  %v124_v50 = vld [vmem:[#allocation3 + $0x68] sm:$0xff]  ;;  %v125_v52 = vld [vmem:[#allocation3 + $0x70] sm:$0xff] }
  0x35   :  { %v140_v51 = vld [vmem:[#allocation3 + $0xe8] sm:$0xff]  ;;  %v141_v53 = vld [vmem:[#allocation3 + $0xf0] sm:$0xff]  ;;  %v126_v54 = vld [vmem:[#allocation3 + $0x78] sm:$0xff] }
  0x36   :  { %716 = vmatpush3.bf16.msra.mxu0 %v713_v13  ;;  %744 = vmatpush3.bf16.msra.mxu1 %v713_v13  ;;  %v142_v55 = vld [vmem:[#allocation3 + $0xf8] sm:$0xff]  ;;  %v884_v56 = vld [vmem:[%s935_s2] ss:$0 sm:$0xff]  ;;  %s830_s2 = smov [#allocation8]  }
  0x37   :  { %718 = vmatprep.subr.bf16.mxu0 %v717_v16  ;;  %737 = vmatprep.subr.bf16.mxu1 %v717_v16  ;;  %s559_s11 = sshll.u32 %s830_s2, 4  ;;  %s560_s11 = int_to_ptr.vmem [resolvable:$true] %s559_s11 }
  0x38   :  { %s798_s12 = scalar_lea.vmem %s560_s11, 4096  ;;  %p803_p3 = scmp.lt.s32.totalorder %s560_s11, %s560_s11 }
  0x39   :  { %p799_p2 = scmp.ne.s32.totalorder %s560_s11, %s798_s12  ;;  %p804_p4 = scmp.lt.s32.totalorder %s798_s12, %s798_s12 }
  0x3a   :  { %720 = vmatpush3.bf16.msra.mxu0 %v717_v16  ;;  %745 = vmatpush3.bf16.msra.mxu1 %v717_v16 }
  0x3b   :  { %722 = vmatprep.subr.bf16.mxu0 %v721_v19  ;;  %738 = vmatprep.subr.bf16.mxu1 %v721_v19  ;;  %p805_p5 = por %p804_p4, %p803_p3 }
  0x3d   :  { %p806_p6 = pnand %p805_p5, %p799_p2 }
  0x3e   :  { %724 = vmatpush3.bf16.msra.mxu0 %v721_v19  ;;  %746 = vmatpush3.bf16.msra.mxu1 %v721_v19 }
  0x3f   :  { %726 = vmatprep.subr.bf16.mxu0 %v725_v22  ;;  %739 = vmatprep.subr.bf16.mxu1 %v725_v22 }
  0x42   :  { %728 = vmatpush3.bf16.msra.mxu0 %v725_v22  ;;  %747 = vmatpush3.bf16.msra.mxu1 %v725_v22 }
  0x43   :  { %730 = vmatprep.subr.bf16.mxu0 %v729_v25  ;;  %740 = vmatprep.subr.bf16.mxu1 %v729_v25 }
  0x46   :  { %732 = vmatpush3.bf16.msra.mxu0 %v729_v25  ;;  %748 = vmatpush3.bf16.msra.mxu1 %v729_v25 }
  0x49   :  { %654 = vmatmul.mubr.f32.vlgmr.msra.gmra.mrb[0].mxu0 %v112_v26  ;;  %678 = vmatmul.mubr.f32.vlgmr.msra.gmra.mrb[0].mxu1 %v128_v27 }
  0x4a   :  { %656 = vmatprep.mubr.f32.mxu0 %v113_v28  ;;  %680 = vmatprep.mubr.f32.mxu1 %v129_v29 }
  0x4d   :  { %657 = vmatmul.mubr.f32.gmra.mrb[2].mxu0 %v114_v30  ;;  %681 = vmatmul.mubr.f32.gmra.mrb[2].mxu1 %v130_v31 }
  0x4e   :  { %659 = vmatprep.mubr.f32.mxu0 %v115_v32  ;;  %683 = vmatprep.mubr.f32.mxu1 %v131_v33 }
  0x51   :  { %660 = vmatmul.mubr.f32.gmra.mrb[4].mxu0 %v116_v34  ;;  %684 = vmatmul.mubr.f32.gmra.mrb[4].mxu1 %v132_v35 }
  0x52   :  { %662 = vmatprep.mubr.f32.mxu0 %v117_v36  ;;  %686 = vmatprep.mubr.f32.mxu1 %v133_v37 }
  0x55   :  { %663 = vmatmul.mubr.f32.gmra.mrb[6].mxu0 %v118_v38  ;;  %687 = vmatmul.mubr.f32.gmra.mrb[6].mxu1 %v134_v39 }
  0x56   :  { %665 = vmatprep.mubr.f32.mxu0 %v119_v40  ;;  %689 = vmatprep.mubr.f32.mxu1 %v135_v41 }
  0x59   :  { %666 = vmatmul.mubr.f32.gmra.mrb[8].mxu0 %v120_v42  ;;  %690 = vmatmul.mubr.f32.gmra.mrb[8].mxu1 %v136_v43 }
  0x5a   :  { %668 = vmatprep.mubr.f32.mxu0 %v121_v44  ;;  %692 = vmatprep.mubr.f32.mxu1 %v137_v45 }
  0x5d   :  { %669 = vmatmul.mubr.f32.gmra.mrb[10].mxu0 %v122_v46  ;;  %693 = vmatmul.mubr.f32.gmra.mrb[10].mxu1 %v138_v47 }
  0x5e   :  { %671 = vmatprep.mubr.f32.mxu0 %v123_v48  ;;  %695 = vmatprep.mubr.f32.mxu1 %v139_v49 }
  0x61   :  { %672 = vmatmul.mubr.f32.gmra.mrb[12].mxu0 %v124_v50  ;;  %696 = vmatmul.mubr.f32.gmra.mrb[12].mxu1 %v140_v51 }
  0x62   :  { %674 = vmatprep.mubr.f32.mxu0 %v125_v52  ;;  %698 = vmatprep.mubr.f32.mxu1 %v141_v53 }
  0x65   :  { %675 = vmatmul.mubr.f32.gmra.mrb[14].mxu0 %v126_v54  ;;  %699 = vmatmul.mubr.f32.gmra.mrb[14].mxu1 %v142_v55 }
 0x11c   :  { %v655_v57 = vpop.f32.mrb[0].mxu0  ;;  %v679_v58 = vpop.f32.mrb[0].mxu1 }
 0x11d   :  { %v491_v59 = vadd.f32 %v655_v57, %v884_v56  ;;  %v507_v60 = vadd.f32 %v679_v58, %v884_v56  ;;  %v225_v61 = vpop.f32.mrb[1].mxu0  ;;  %v305_v62 = vpop.f32.mrb[1].mxu1 }
 0x11e   :  { %v490_v63 = vadd.f32 %v884_v56, %v225_v61  ;;  %v506_v0 = vadd.f32 %v884_v56, %v305_v62 }
 0x11f   :  { %523 = vst [vmem:[#allocation8 + $0x8] sm:$0xff] %v491_v59  ;;  %539 = vst [vmem:[#allocation8 + $0x88] sm:$0xff] %v507_v60 }
 0x120   :  { %522 = vst [vmem:[#allocation8] sm:$0xff] %v490_v63  ;;  %538 = vst [vmem:[#allocation8 + $0x80] sm:$0xff] %v506_v0  ;;  %v658_v1 = vpop.f32.mrb[2].mxu0  ;;  %v682_v2 = vpop.f32.mrb[2].mxu1 }
 0x121   :  { %v493_v3 = vadd.f32 %v658_v1, %v884_v56  ;;  %v509_v4 = vadd.f32 %v682_v2, %v884_v56  ;;  %v235_v5 = vpop.f32.mrb[3].mxu0  ;;  %v315_v6 = vpop.f32.mrb[3].mxu1 }
 0x122   :  { %v492_v7 = vadd.f32 %v884_v56, %v235_v5  ;;  %v508_v8 = vadd.f32 %v884_v56, %v315_v6 }
 0x123   :  { %525 = vst [vmem:[#allocation8 + $0x18] sm:$0xff] %v493_v3  ;;  %541 = vst [vmem:[#allocation8 + $0x98] sm:$0xff] %v509_v4 }
 0x124   :  { %524 = vst [vmem:[#allocation8 + $0x10] sm:$0xff] %v492_v7  ;;  %540 = vst [vmem:[#allocation8 + $0x90] sm:$0xff] %v508_v8  ;;  %v661_v9 = vpop.f32.mrb[4].mxu0  ;;  %v685_v10 = vpop.f32.mrb[4].mxu1 }
 0x125   :  { %v495_v11 = vadd.f32 %v661_v9, %v884_v56  ;;  %v511_v12 = vadd.f32 %v685_v10, %v884_v56  ;;  %v245_v13 = vpop.f32.mrb[5].mxu0  ;;  %v325_v14 = vpop.f32.mrb[5].mxu1 }
 0x126   :  { %v494_v15 = vadd.f32 %v884_v56, %v245_v13  ;;  %v510_v16 = vadd.f32 %v884_v56, %v325_v14 }
 0x127   :  { %527 = vst [vmem:[#allocation8 + $0x28] sm:$0xff] %v495_v11  ;;  %543 = vst [vmem:[#allocation8 + $0xa8] sm:$0xff] %v511_v12 }
 0x128   :  { %526 = vst [vmem:[#allocation8 + $0x20] sm:$0xff] %v494_v15  ;;  %542 = vst [vmem:[#allocation8 + $0xa0] sm:$0xff] %v510_v16  ;;  %v664_v17 = vpop.f32.mrb[6].mxu0  ;;  %v688_v18 = vpop.f32.mrb[6].mxu1 }
 0x129   :  { %v497_v19 = vadd.f32 %v664_v17, %v884_v56  ;;  %v513_v20 = vadd.f32 %v688_v18, %v884_v56  ;;  %v255_v21 = vpop.f32.mrb[7].mxu0  ;;  %v335_v22 = vpop.f32.mrb[7].mxu1 }
 0x12a   :  { %v496_v23 = vadd.f32 %v884_v56, %v255_v21  ;;  %v512_v24 = vadd.f32 %v884_v56, %v335_v22 }
 0x12b   :  { %529 = vst [vmem:[#allocation8 + $0x38] sm:$0xff] %v497_v19  ;;  %545 = vst [vmem:[#allocation8 + $0xb8] sm:$0xff] %v513_v20 }
 0x12c   :  { %528 = vst [vmem:[#allocation8 + $0x30] sm:$0xff] %v496_v23  ;;  %544 = vst [vmem:[#allocation8 + $0xb0] sm:$0xff] %v512_v24  ;;  %v667_v25 = vpop.f32.mrb[8].mxu0  ;;  %v691_v26 = vpop.f32.mrb[8].mxu1 }
 0x12d   :  { %v499_v27 = vadd.f32 %v667_v25, %v884_v56  ;;  %v515_v28 = vadd.f32 %v691_v26, %v884_v56  ;;  %v265_v29 = vpop.f32.mrb[9].mxu0  ;;  %v345_v30 = vpop.f32.mrb[9].mxu1 }
 0x12e   :  { %v498_v31 = vadd.f32 %v884_v56, %v265_v29  ;;  %v514_v32 = vadd.f32 %v884_v56, %v345_v30 }
 0x12f   :  { %531 = vst [vmem:[#allocation8 + $0x48] sm:$0xff] %v499_v27  ;;  %547 = vst [vmem:[#allocation8 + $0xc8] sm:$0xff] %v515_v28 }
 0x130   :  { %530 = vst [vmem:[#allocation8 + $0x40] sm:$0xff] %v498_v31  ;;  %546 = vst [vmem:[#allocation8 + $0xc0] sm:$0xff] %v514_v32  ;;  %v670_v33 = vpop.f32.mrb[10].mxu0  ;;  %v694_v34 = vpop.f32.mrb[10].mxu1 }
 0x131   :  { %v501_v35 = vadd.f32 %v670_v33, %v884_v56  ;;  %v517_v36 = vadd.f32 %v694_v34, %v884_v56  ;;  %v275_v37 = vpop.f32.mrb[11].mxu0  ;;  %v355_v38 = vpop.f32.mrb[11].mxu1 }
 0x132   :  { %v500_v39 = vadd.f32 %v884_v56, %v275_v37  ;;  %v516_v40 = vadd.f32 %v884_v56, %v355_v38 }
 0x133   :  { %533 = vst [vmem:[#allocation8 + $0x58] sm:$0xff] %v501_v35  ;;  %549 = vst [vmem:[#allocation8 + $0xd8] sm:$0xff] %v517_v36 }
 0x134   :  { %532 = vst [vmem:[#allocation8 + $0x50] sm:$0xff] %v500_v39  ;;  %548 = vst [vmem:[#allocation8 + $0xd0] sm:$0xff] %v516_v40  ;;  %v673_v41 = vpop.f32.mrb[12].mxu0  ;;  %v697_v42 = vpop.f32.mrb[12].mxu1 }
 0x135   :  { %v503_v43 = vadd.f32 %v673_v41, %v884_v56  ;;  %v519_v44 = vadd.f32 %v697_v42, %v884_v56  ;;  %v285_v45 = vpop.f32.mrb[13].mxu0  ;;  %v365_v46 = vpop.f32.mrb[13].mxu1 }
 0x136   :  { %v502_v47 = vadd.f32 %v884_v56, %v285_v45  ;;  %v518_v48 = vadd.f32 %v884_v56, %v365_v46 }
 0x137   :  { %535 = vst [vmem:[#allocation8 + $0x68] sm:$0xff] %v503_v43  ;;  %551 = vst [vmem:[#allocation8 + $0xe8] sm:$0xff] %v519_v44 }
 0x138   :  { %534 = vst [vmem:[#allocation8 + $0x60] sm:$0xff] %v502_v47  ;;  %550 = vst [vmem:[#allocation8 + $0xe0] sm:$0xff] %v518_v48  ;;  %v676_v49 = vpop.f32.mrb[14].mxu0  ;;  %v700_v50 = vpop.f32.mrb[14].mxu1 }
 0x139   :  { %v505_v51 = vadd.f32 %v676_v49, %v884_v56  ;;  %v521_v52 = vadd.f32 %v700_v50, %v884_v56  ;;  %v295_v53 = vpop.f32.mrb[15].mxu0  ;;  %v375_v54 = vpop.f32.mrb[15].mxu1 }
 0x13a   :  { %v504_v55 = vadd.f32 %v884_v56, %v295_v53  ;;  %v520_v57 = vadd.f32 %v884_v56, %v375_v54 }
 0x13b   :  { %537 = vst [vmem:[#allocation8 + $0x78] sm:$0xff] %v505_v51  ;;  %553 = vst [vmem:[#allocation8 + $0xf8] sm:$0xff] %v521_v52 }
 0x13c   :  { %536 = vst [vmem:[#allocation8 + $0x70] sm:$0xff] %v504_v55  ;;  %552 = vst [vmem:[#allocation8 + $0xf0] sm:$0xff] %v520_v57 }
 0x13d   :  { %809 = shalt.err (!%p806_p6)
}
 0x13e   :  { %s810_s15 = scalar_lea.hbm %s936_s3, 4096 }
 0x13f   :  { %p811_p7 = scmp.ne.s32.totalorder %s936_s3, %s810_s15  ;;  %p814_p8 = scmp.lt.u32.totalorder %s810_s15, %s936_s3 }
 0x141   :  { %p816_p9 = pnand %p814_p8, %p811_p7 }
 0x143   :  { %819 = shalt.err (!%p816_p9)
}
 0x144   :  { %565 = dma.vmem_to_hbm [thread:$0]  %s560_s11, 4096, %s936_s3, [#allocation5], %s827_s22, %s827_s22, %s828_s23  }
 0x145   :  { %824 = dma.done.wait [#allocation5], 4096  }
 0x146   :  { %825 = vsyncadd [#allocation5], 4294963200 }
 0x147   :  { %569 = vsyncpa [#allocation4], 1 }
 0x148   :  { %570 = vsyncpa [#allocation7], 1 }
 0x149   :  { %571 = vsyncpa [#allocation5], 1 }

</bundles_post_ra>
